<compile_context>
chip_gen: v7x
topology: tpu7x:2x2x1
jax: 0.10.0
libtpu: 0.0.40
codegen_flags: <defaults>
</compile_context>

<pallas_src>
import jax
import jax.numpy as jnp
from jax.experimental import pallas as pl
from jax.experimental.pallas import tpu as pltpu


_LANE = 128            # vreg lane width (last dim)
_SUBLANE = 8           # f32 sublane count (second-to-last dim)
_MEGACORE_MIN_ROWS = 256  # min rows per core before we bother splitting for v7x


def _round_up(x, m):
    return ((x + m - 1) // m) * m


def fc_kernel(x_ref, w1_ref, b1_ref, w2_ref, b2_ref, w3_ref, b3_ref, o_ref):
    # Fused forward for one batch tile: three bf16 MXU matmuls (f32 accumulate)
    # plus f32 bias-add / ReLU on the VPU.
    x = x_ref[...]
    h1 = jnp.dot(x, w1_ref[...], preferred_element_type=jnp.float32) + b1_ref[...]
    h1 = jnp.maximum(h1, 0.0).astype(w2_ref.dtype)
    h2 = jnp.dot(h1, w2_ref[...], preferred_element_type=jnp.float32) + b2_ref[...]
    h2 = jnp.maximum(h2, 0.0).astype(w3_ref.dtype)
    q = jnp.dot(h2, w3_ref[...], preferred_element_type=jnp.float32) + b3_ref[...]
    o_ref[...] = q.astype(o_ref.dtype)


def prepare_params(params, *, compute_dtype=jnp.bfloat16):
    """One-time kernel-side prep (amortized across all forward calls):
    cast weights to the MXU-native compute dtype (bf16) and pad layer 3's
    output axis (num_actions) up to a lane-dense multiple of 128.  Biases stay
    f32 (added to the f32 accumulator)."""
    w1, b1, w2, b2, w3, b3 = (params["w1"], params["b1"], params["w2"],
                              params["b2"], params["w3"], params["b3"])
    H2, A = w3.shape
    A_p = _round_up(max(A, _LANE), _LANE)
    f32 = jnp.float32
    w3_p = jnp.zeros((H2, A_p), compute_dtype).at[:, :A].set(w3.astype(compute_dtype))
    b3_p = jnp.zeros((1, A_p), f32).at[:, :A].set(b3.astype(f32))
    return {
        "w1": w1.astype(compute_dtype), "b1": b1.astype(f32),
        "w2": w2.astype(compute_dtype), "b2": b2.astype(f32),
        "w3": w3_p, "b3": b3_p,
    }


def fc_forward(state, kp, *, num_actions=None, block_b=512):
    """state: [B, state_dim].  kp: output of prepare_params()."""
    w1, b1, w2, b2, w3, b3 = (kp["w1"], kp["b1"], kp["w2"],
                              kp["b2"], kp["w3"], kp["b3"])
    B, S = state.shape
    H1, H2, A_p = w1.shape[1], w2.shape[1], w3.shape[1]
    if num_actions is None:
        num_actions = A_p

    cdt = w1.dtype  # bf16 MXU compute dtype

    # Pad batch only up to a sublane multiple; Pallas clips the partial last
    # grid block, so no further batch padding is needed.
    B_p = _round_up(max(B, _SUBLANE), _SUBLANE)
    x = state.astype(cdt)
    if B_p != B:
        x = jnp.pad(x, ((0, B_p - B), (0, 0)))

    TB = min(block_b, B_p)
    n_tiles = pl.cdiv(B_p, TB)
    # v7x megacore: if a large batch landed in a single tile, split it so the
    # "parallel" batch axis can actually shard across both TensorCores.
    if n_tiles == 1 and B_p >= 2 * _MEGACORE_MIN_ROWS:
        TB = _round_up(pl.cdiv(B_p, 2), _SUBLANE)
        n_tiles = pl.cdiv(B_p, TB)

    # Advisory cost hint for XLA's scheduler.
    flops = 2 * B_p * (S * H1 + H1 * H2 + H2 * A_p)
    bytes_accessed = (x.size * x.dtype.itemsize
                      + sum(int(a.size) * a.dtype.itemsize
                            for a in (w1, b1, w2, b2, w3, b3))
                      + B_p * A_p * 4)

    const = lambda shape: pl.BlockSpec(shape, lambda i: (0, 0))

    out = pl.pallas_call(
        fc_kernel,
        out_shape=jax.ShapeDtypeStruct((B_p, A_p), jnp.float32),
        grid=(n_tiles,),
        in_specs=[
            pl.BlockSpec((TB, S), lambda i: (i, 0)),   # x tile, pipelined over batch
            const((S, H1)), const((1, H1)),            # weights/biases: VMEM-resident,
            const((H1, H2)), const((1, H2)),           # constant index -> DMA'd once
            const((H2, A_p)), const((1, A_p)),
        ],
        out_specs=pl.BlockSpec((TB, A_p), lambda i: (i, 0)),   # lane-dense stores
        compiler_params=pltpu.CompilerParams(
            dimension_semantics=("parallel",),   # batch tiles shard across TCs (v7x)
            vmem_limit_bytes=16 << 20,
        ),
        cost_estimate=pl.CostEstimate(
            flops=flops, transcendentals=0, bytes_accessed=bytes_accessed),
    )(x, w1, b1, w2, b2, w3, b3)

    # Slice off batch / action padding.
    return out[:B, :num_actions].astype(state.dtype)


def init_params(key, state_dim, num_actions, hidden=256):
    # PyTorch-style uniform(-1/sqrt(fan_in), 1/sqrt(fan_in)) init, f32,
    # weights stored pre-transposed as [in, out].
    ks = jax.random.split(key, 6)

    def lin(kw, kb, fan_in, fan_out):
        bound = 1.0 / jnp.sqrt(fan_in)
        w = jax.random.uniform(kw, (fan_in, fan_out), jnp.float32, -bound, bound)
        b = jax.random.uniform(kb, (1, fan_out), jnp.float32, -bound, bound)
        return w, b

    w1, b1 = lin(ks[0], ks[1], state_dim, hidden)
    w2, b2 = lin(ks[2], ks[3], hidden, hidden)
    w3, b3 = lin(ks[4], ks[5], hidden, num_actions)
    return {"w1": w1, "b1": b1, "w2": w2, "b2": b2, "w3": w3, "b3": b3}


def fc_reference(state, p):
    h = jnp.maximum(state @ p["w1"] + p["b1"], 0.0)
    h = jnp.maximum(h @ p["w2"] + p["b2"], 0.0)
    return h @ p["w3"] + p["b3"]


if __name__ == "__main__":
    key = jax.random.PRNGKey(0)
    k_param, k_state = jax.random.split(key)

    batch, state_dim, num_actions = 2, 16, 8
    params = init_params(k_param, state_dim, num_actions)
    kparams = prepare_params(params)           # one-time pad/cast, reused per call

    # bf16 MXU operands (f32 accumulation) -> compare to f32 reference with a
    # correspondingly relaxed tolerance.
    ATOL = RTOL = 2e-2

    state = jax.random.normal(k_state, (batch, state_dim), jnp.float32)
    out = jax.block_until_ready(fc_forward(state, kparams, num_actions=num_actions))
    ref = fc_reference(state, params)
    assert out.shape == (batch, num_actions)
    assert jnp.allclose(out, ref, atol=ATOL, rtol=RTOL)

    # Larger batch spanning multiple grid tiles, including a partial last block.
    big_state = jax.random.normal(k_state, (600, state_dim), jnp.float32)
    big_out = jax.block_until_ready(
        fc_forward(big_state, kparams, num_actions=num_actions))
    big_ref = fc_reference(big_state, params)
    assert big_out.shape == (600, num_actions)
    assert jnp.allclose(big_out, big_ref, atol=ATOL, rtol=RTOL)

    print("KERNEL_OK")
</pallas_src>

<mosaic_0001>
module attributes {stable_mosaic.version = 11 : i64} {
  func.func @fc_kernel(%arg0: i32, %arg1: memref<8x16xbf16, #tpu.memory_space<vmem>>, %arg2: memref<16x256xbf16, #tpu.memory_space<vmem>>, %arg3: memref<1x256xf32, #tpu.memory_space<vmem>>, %arg4: memref<256x256xbf16, #tpu.memory_space<vmem>>, %arg5: memref<1x256xf32, #tpu.memory_space<vmem>>, %arg6: memref<256x128xbf16, #tpu.memory_space<vmem>>, %arg7: memref<1x128xf32, #tpu.memory_space<vmem>>, %arg8: memref<8x128xf32, #tpu.memory_space<vmem>>) attributes {dimension_semantics = [#tpu.dimension_semantics<parallel>], iteration_bounds = array<i64: 1>, scalar_prefetch = 0 : i64, scratch_operands = 0 : i64, tpu.core_type = #tpu.core_type<tc>, window_params = [{transform_indices = @transform_0, window_bounds = array<i64: 8, 16>}, {pipeline_mode = #tpu.pipeline_mode<synchronous>, transform_indices = @transform_1, window_bounds = array<i64: 16, 256>}, {pipeline_mode = #tpu.pipeline_mode<synchronous>, transform_indices = @transform_2, window_bounds = array<i64: 1, 256>}, {pipeline_mode = #tpu.pipeline_mode<synchronous>, transform_indices = @transform_3, window_bounds = array<i64: 256, 256>}, {pipeline_mode = #tpu.pipeline_mode<synchronous>, transform_indices = @transform_4, window_bounds = array<i64: 1, 256>}, {pipeline_mode = #tpu.pipeline_mode<synchronous>, transform_indices = @transform_5, window_bounds = array<i64: 256, 128>}, {pipeline_mode = #tpu.pipeline_mode<synchronous>, transform_indices = @transform_6, window_bounds = array<i64: 1, 128>}, {transform_indices = @transform_7, window_bounds = array<i64: 8, 128>}]} {
    %c0 = arith.constant 0 : index
    %c0_0 = arith.constant 0 : index
    %0 = vector.load %arg1[%c0, %c0_0] : memref<8x16xbf16, #tpu.memory_space<vmem>>, vector<8x16xbf16>
    %c0_1 = arith.constant 0 : index
    %c0_2 = arith.constant 0 : index
    %1 = vector.load %arg2[%c0_1, %c0_2] : memref<16x256xbf16, #tpu.memory_space<vmem>>, vector<16x256xbf16>
    %cst = arith.constant dense<0.000000e+00> : vector<8x256xf32>
    %2 = tpu.matmul %0, %1, %cst {dimension_numbers = #tpu.dot_dimension_numbers<[1], [0], [0], [1], [0, 0, 1, 1], [], []>} : vector<8x16xbf16>, vector<16x256xbf16>, vector<8x256xf32> -> vector<8x256xf32>
    %c0_3 = arith.constant 0 : index
    %c0_4 = arith.constant 0 : index
    %3 = vector.load %arg3[%c0_3, %c0_4] : memref<1x256xf32, #tpu.memory_space<vmem>>, vector<1x256xf32>
    %4 = vector.broadcast %3 : vector<1x256xf32> to vector<8x256xf32>
    %5 = arith.addf %2, %4 : vector<8x256xf32>
    %cst_5 = arith.constant 0.000000e+00 : f32
    %6 = vector.broadcast %cst_5 : f32 to vector<8x256xf32>
    %7 = arith.maximumf %5, %6 : vector<8x256xf32>
    %8 = arith.truncf %7 : vector<8x256xf32> to vector<8x256xbf16>
    %c0_6 = arith.constant 0 : index
    %c0_7 = arith.constant 0 : index
    %9 = vector.load %arg4[%c0_6, %c0_7] : memref<256x256xbf16, #tpu.memory_space<vmem>>, vector<256x256xbf16>
    %cst_8 = arith.constant dense<0.000000e+00> : vector<8x256xf32>
    %10 = tpu.matmul %8, %9, %cst_8 {dimension_numbers = #tpu.dot_dimension_numbers<[1], [0], [0], [1], [0, 0, 1, 1], [], []>} : vector<8x256xbf16>, vector<256x256xbf16>, vector<8x256xf32> -> vector<8x256xf32>
    %c0_9 = arith.constant 0 : index
    %c0_10 = arith.constant 0 : index
    %11 = vector.load %arg5[%c0_9, %c0_10] : memref<1x256xf32, #tpu.memory_space<vmem>>, vector<1x256xf32>
    %12 = vector.broadcast %11 : vector<1x256xf32> to vector<8x256xf32>
    %13 = arith.addf %10, %12 : vector<8x256xf32>
    %cst_11 = arith.constant 0.000000e+00 : f32
    %14 = vector.broadcast %cst_11 : f32 to vector<8x256xf32>
    %15 = arith.maximumf %13, %14 : vector<8x256xf32>
    %16 = arith.truncf %15 : vector<8x256xf32> to vector<8x256xbf16>
    %c0_12 = arith.constant 0 : index
    %c0_13 = arith.constant 0 : index
    %17 = vector.load %arg6[%c0_12, %c0_13] : memref<256x128xbf16, #tpu.memory_space<vmem>>, vector<256x128xbf16>
    %cst_14 = arith.constant dense<0.000000e+00> : vector<8x128xf32>
    %18 = tpu.matmul %16, %17, %cst_14 {dimension_numbers = #tpu.dot_dimension_numbers<[1], [0], [0], [1], [0, 0, 1, 1], [], []>} : vector<8x256xbf16>, vector<256x128xbf16>, vector<8x128xf32> -> vector<8x128xf32>
    %c0_15 = arith.constant 0 : index
    %c0_16 = arith.constant 0 : index
    %19 = vector.load %arg7[%c0_15, %c0_16] : memref<1x128xf32, #tpu.memory_space<vmem>>, vector<1x128xf32>
    %20 = vector.broadcast %19 : vector<1x128xf32> to vector<8x128xf32>
    %21 = arith.addf %18, %20 : vector<8x128xf32>
    %c0_17 = arith.constant 0 : index
    %c0_18 = arith.constant 0 : index
    %22 = vector.load %arg8[%c0_17, %c0_18] : memref<8x128xf32, #tpu.memory_space<vmem>>, vector<8x128xf32>
    tpu.vector_store %arg8[%c0_17, %c0_18], %21 {strides = array<i32>} : memref<8x128xf32, #tpu.memory_space<vmem>>, vector<8x128xf32>,
    return
  }
  func.func @transform_0(%arg0: i32) -> (i32, i32) {
    %c0_i32 = arith.constant 0 : i32
    %c0_i32_0 = arith.constant 0 : i32
    return %arg0, %c0_i32 : i32, i32
  }
  func.func @transform_1(%arg0: i32) -> (i32, i32) {
    %c0_i32 = arith.constant 0 : i32
    %c0_i32_0 = arith.constant 0 : i32
    %c0_i32_1 = arith.constant 0 : i32
    return %c0_i32, %c0_i32_0 : i32, i32
  }
  func.func @transform_2(%arg0: i32) -> (i32, i32) {
    %c0_i32 = arith.constant 0 : i32
    %c0_i32_0 = arith.constant 0 : i32
    %c0_i32_1 = arith.constant 0 : i32
    return %c0_i32, %c0_i32_0 : i32, i32
  }
  func.func @transform_3(%arg0: i32) -> (i32, i32) {
    %c0_i32 = arith.constant 0 : i32
    %c0_i32_0 = arith.constant 0 : i32
    %c0_i32_1 = arith.constant 0 : i32
    return %c0_i32, %c0_i32_0 : i32, i32
  }
  func.func @transform_4(%arg0: i32) -> (i32, i32) {
    %c0_i32 = arith.constant 0 : i32
    %c0_i32_0 = arith.constant 0 : i32
    %c0_i32_1 = arith.constant 0 : i32
    return %c0_i32, %c0_i32_0 : i32, i32
  }
  func.func @transform_5(%arg0: i32) -> (i32, i32) {
    %c0_i32 = arith.constant 0 : i32
    %c0_i32_0 = arith.constant 0 : i32
    %c0_i32_1 = arith.constant 0 : i32
    return %c0_i32, %c0_i32_0 : i32, i32
  }
  func.func @transform_6(%arg0: i32) -> (i32, i32) {
    %c0_i32 = arith.constant 0 : i32
    %c0_i32_0 = arith.constant 0 : i32
    %c0_i32_1 = arith.constant 0 : i32
    return %c0_i32, %c0_i32_0 : i32, i32
  }
  func.func @transform_7(%arg0: i32) -> (i32, i32) {
    %c0_i32 = arith.constant 0 : i32
    %c0_i32_0 = arith.constant 0 : i32
    return %arg0, %c0_i32 : i32, i32
  }
}

</mosaic_0001>

<bundles_post_ra>
// kernel: tpu_custom_call.1
= control target key start
LH: loop header
LB: loop body
LE: loop exit
PB: predicated region body
PF: predicated region fallthrough
CT: control target
= control target key end

     0   :  { %12 = vsyncpa [#allocation3], 0  ;;  %s991_s0 = inlined_call_operand.hbm [shape: bf16[8,16], index: 0, kind: input, shape index: {}]   ;;  %s992_s1 = inlined_call_operand.hbm [shape: bf16[16,256], index: 1, kind: input, shape index: {}]   ;;  %s993_s2 = inlined_call_operand.vmem [shape: f32[1,256], index: 2, kind: input, shape index: {}]   ;;  %s994_s3 = inlined_call_operand.hbm [shape: bf16[256,256], index: 3, kind: input, shape index: {}]   ;;  %s995_s4 = inlined_call_operand.vmem [shape: f32[1,256], index: 4, kind: input, shape index: {}]   ;;  %s996_s5 = inlined_call_operand.hbm [shape: bf16[256,128], index: 5, kind: input, shape index: {}]   ;;  %s997_s6 = inlined_call_operand.vmem [shape: f32[1,128], index: 6, kind: input, shape index: {}]   ;;  %s998_s7 = inlined_call_operand.hbm [shape: f32[8,128], index: 7, kind: output, shape index: {}]  }
   0x1   :  { %13 = vsyncpa [#allocation6], 0 }
   0x2   :  { %14 = vsyncpa [#allocation9], 0 }
   0x3   :  { %15 = vsyncpa [#allocation4], 0  ;;  %s866_s24 = smov [#allocation5]   ;;  %s748_s28 = scalar_lea.hbm %s992_s1, 256 }
   0x4   :  { %s31_s25 = sshll.u32 %s866_s24, 4  ;;  %p749_p0 = scmp.ne.s32.totalorder %s992_s1, %s748_s28  ;;  %s32_s25 = int_to_ptr.vmem [resolvable:$true] %s31_s25 }
   0x5   :  { %p752_p1 = scmp.lt.u32.totalorder %s748_s28, %s992_s1 }
   0x7   :  { %p754_p2 = pnand %p752_p1, %p749_p0 }
   0x9   :  { %757 = shalt.err (!%p754_p2)
}
   0xa   :  { %s758_s10 = scalar_lea.vmem %s32_s25, 256  ;;  %p763_p4 = scmp.lt.s32.totalorder %s32_s25, %s32_s25 }
   0xb   :  { %p759_p3 = scmp.ne.s32.totalorder %s32_s25, %s758_s10  ;;  %p764_p5 = scmp.lt.s32.totalorder %s758_s10, %s758_s10 }
   0xd   :  { %p765_p6 = por %p764_p5, %p763_p4 }
   0xf   :  { %p766_p7 = pnand %p765_p6, %p759_p3 }
  0x11   :  { %769 = shalt.err (!%p766_p7)
}
  0x12   :  { %s867_s11 = smov 128   ;;  %s868_s12 = smov 8  }
  0x13   :  { %37 = dma.hbm_to_vmem [thread:$0]  %s992_s1, 256, %s32_s25, [#allocation6], %s867_s11, %s867_s11, %s868_s12  }
  0x14   :  { %s869_s15 = smov [#allocation2]   ;;  %s870_s17 = smov [#allocation7]  }
  0x15   :  { %s22_s16 = sshll.u32 %s869_s15, 4  ;;  %s45_s18 = sshll.u32 %s870_s17, 4  ;;  %s23_s16 = int_to_ptr.vmem [resolvable:$true] %s22_s16  ;;  %s46_s18 = int_to_ptr.vmem [resolvable:$true] %s45_s18 }
  0x16   :  { %s770_s21 = scalar_lea.hbm %s991_s0, 64 }
  0x17   :  { %p771_p8 = scmp.ne.s32.totalorder %s991_s0, %s770_s21  ;;  %p774_p9 = scmp.lt.u32.totalorder %s770_s21, %s991_s0 }
  0x19   :  { %p776_p10 = pnand %p774_p9, %p771_p8 }
  0x1b   :  { %779 = shalt.err (!%p776_p10)
}
  0x1c   :  { %s780_s1 = scalar_lea.vmem %s23_s16, 64  ;;  %p785_p12 = scmp.lt.s32.totalorder %s23_s16, %s23_s16 }
  0x1d   :  { %p781_p11 = scmp.ne.s32.totalorder %s23_s16, %s780_s1  ;;  %p786_p13 = scmp.lt.s32.totalorder %s780_s1, %s780_s1 }
  0x1f   :  { %p787_p0 = por %p786_p13, %p785_p12 }
  0x21   :  { %p788_p1 = pnand %p787_p0, %p781_p11 }
  0x23   :  { %791 = shalt.err (!%p788_p1)
}
  0x24   :  { %25 = dma.hbm_to_vmem [thread:$0]  %s991_s0, 64, %s23_s16, [#allocation3]  }
  0x25   :  { %s792_s30 = scalar_lea.hbm %s994_s3, 4096 }
  0x26   :  { %p793_p2 = scmp.ne.s32.totalorder %s994_s3, %s792_s30  ;;  %p796_p3 = scmp.lt.u32.totalorder %s792_s30, %s994_s3 }
  0x28   :  { %p798_p4 = pnand %p796_p3, %p793_p2 }
  0x2a   :  { %801 = shalt.err (!%p798_p4)
}
  0x2b   :  { %s802_s14 = scalar_lea.vmem %s46_s18, 4096  ;;  %p807_p6 = scmp.lt.s32.totalorder %s46_s18, %s46_s18 }
  0x2c   :  { %p803_p5 = scmp.ne.s32.totalorder %s46_s18, %s802_s14  ;;  %p808_p7 = scmp.lt.s32.totalorder %s802_s14, %s802_s14 }
  0x2e   :  { %p809_p8 = por %p808_p7, %p807_p6 }
  0x30   :  { %p810_p9 = pnand %p809_p8, %p803_p5 }
  0x32   :  { %813 = shalt.err (!%p810_p9)
}
  0x33   :  { %51 = dma.hbm_to_vmem [thread:$0]  %s994_s3, 4096, %s46_s18, [#allocation6], %s867_s11, %s867_s11, %s868_s12  }
  0x34   :  { %s871_s16 = smov [#allocation8]   ;;  %s814_s21 = scalar_lea.hbm %s996_s5, 2048 }
  0x35   :  { %s59_s17 = sshll.u32 %s871_s16, 4  ;;  %p815_p10 = scmp.ne.s32.totalorder %s996_s5, %s814_s21  ;;  %s60_s17 = int_to_ptr.vmem [resolvable:$true] %s59_s17 }
  0x36   :  { %p818_p11 = scmp.lt.u32.totalorder %s814_s21, %s996_s5 }
  0x38   :  { %p820_p12 = pnand %p818_p11, %p815_p10 }
  0x3a   :  { %823 = shalt.err (!%p820_p12)
}
  0x3b   :  { %s824_s1 = scalar_lea.vmem %s60_s17, 2048  ;;  %p829_p0 = scmp.lt.s32.totalorder %s60_s17, %s60_s17 }
  0x3c   :  { %p825_p13 = scmp.ne.s32.totalorder %s60_s17, %s824_s1  ;;  %p830_p1 = scmp.lt.s32.totalorder %s824_s1, %s824_s1 }
  0x3e   :  { %p831_p2 = por %p830_p1, %p829_p0 }
  0x40   :  { %p832_p3 = pnand %p831_p2, %p825_p13 }
  0x42   :  { %835 = shalt.err (!%p832_p3)
}
  0x43   :  { %s872_s3 = smov 64   ;;  %s873_s11 = smov 4  }
  0x44   :  { %65 = dma.hbm_to_vmem [thread:$0]  %s996_s5, 2048, %s60_s17, [#allocation9], %s872_s3, %s872_s3, %s873_s11  }
  0x45   :  { %858 = dma.done.wait [#allocation3], 64  }
  0x46   :  { %859 = vsyncadd [#allocation3], 4294967232 }
  0x47   :  { %860 = dma.done.wait [#allocation6], 4352  }
  0x48   :  { %861 = vsyncadd [#allocation6], 4294962944 }
  0x49   :  { %862 = dma.done.wait [#allocation9], 2048  }
  0x4a   :  { %863 = vsyncadd [#allocation9], 4294965248  ;;  %v874_v0 = vmov 0   ;;  %v681_v1 = vld [vmem:[#allocation5 + $0x4] ss:$8 sps:$4 sm:$0xff]   ;;  %vm106_vm0 = vcmask 130048   ;;  %v86_v48 = vlaneseq }
  0x4b   :  { %142 = vmatprep.mubr.bf16.mxu0 %v874_v0  ;;  %v683_v2 = vld [vmem:[#allocation5] ss:$8 sps:$4 sm:$0xff]   ;;  %v81_v3 = vld [vmem:[#allocation2] sm:$0xf]  ;;  %110 = vmatprep.subr.bf16.mxu0 %v681_v1  ;;  %v686_v5 = vld [vmem:[#allocation7] ss:$8 sps:$4 sm:$0xff]  }
  0x4c   :  { %v684_v4 = vld [vmem:[#allocation7 + $0x4] ss:$8 sps:$4 sm:$0xff]   ;;  %111 = vmatpush1.bf16.msra.mxu0 %v683_v2  ;;  %v687_v6 = vld [vmem:[#allocation7 + $0x14] ss:$8 sps:$4 sm:$0xff]   ;;  %v689_v7 = vld [vmem:[#allocation7 + $0x10] ss:$8 sps:$4 sm:$0xff]  }
  0x4d   :  { %359 = vmatprep.subr.bf16.mxu1 %v684_v4  ;;  %v690_v8 = vld [vmem:[#allocation7 + $0x24] ss:$8 sps:$4 sm:$0xff]   ;;  %v692_v9 = vld [vmem:[#allocation7 + $0x20] ss:$8 sps:$4 sm:$0xff]   ;;  %v693_v10 = vld [vmem:[#allocation7 + $0x34] ss:$8 sps:$4 sm:$0xff]  }
  0x4e   :  { %360 = vmatpush1.bf16.msra.mxu1 %v686_v5  ;;  %v695_v11 = vld [vmem:[#allocation7 + $0x30] ss:$8 sps:$4 sm:$0xff]   ;;  %v696_v12 = vld [vmem:[#allocation7 + $0x44] ss:$8 sps:$4 sm:$0xff]   ;;  %v698_v13 = vld [vmem:[#allocation7 + $0x40] ss:$8 sps:$4 sm:$0xff]  }
  0x4f   :  { %599 = vmatmul.mubr.msk.bf16.vlgmr.msra.gmra.mrb[0].mxu0 %vm106_vm0, %v81_v3  ;;  %361 = vmatprep.subr.bf16.mxu1 %v687_v6  ;;  %v699_v14 = vld [vmem:[#allocation7 + $0x54] ss:$8 sps:$4 sm:$0xff]   ;;  %v701_v15 = vld [vmem:[#allocation7 + $0x50] ss:$8 sps:$4 sm:$0xff]   ;;  %v702_v16 = vld [vmem:[#allocation7 + $0x64] ss:$8 sps:$4 sm:$0xff]  }
  0x50   :  { %v704_v17 = vld [vmem:[#allocation7 + $0x60] ss:$8 sps:$4 sm:$0xff]   ;;  %v705_v18 = vld [vmem:[#allocation7 + $0x74] ss:$8 sps:$4 sm:$0xff]   ;;  %v707_v19 = vld [vmem:[#allocation7 + $0x70] ss:$8 sps:$4 sm:$0xff]  }
  0x51   :  { %v708_v20 = vld [vmem:[#allocation7 + $0x84] ss:$8 sps:$4 sm:$0xff]   ;;  %v710_v21 = vld [vmem:[#allocation7 + $0x80] ss:$8 sps:$4 sm:$0xff]   ;;  %v711_v22 = vld [vmem:[#allocation7 + $0x94] ss:$8 sps:$4 sm:$0xff]  }
  0x52   :  { %362 = vmatpush1.bf16.msra.mxu1 %v689_v7  ;;  %v713_v23 = vld [vmem:[#allocation7 + $0x90] ss:$8 sps:$4 sm:$0xff]   ;;  %v714_v24 = vld [vmem:[#allocation7 + $0xa4] ss:$8 sps:$4 sm:$0xff]   ;;  %v716_v25 = vld [vmem:[#allocation7 + $0xa0] ss:$8 sps:$4 sm:$0xff]  }
  0x53   :  { %363 = vmatprep.subr.bf16.mxu1 %v690_v8  ;;  %v717_v26 = vld [vmem:[#allocation7 + $0xb4] ss:$8 sps:$4 sm:$0xff]   ;;  %v719_v27 = vld [vmem:[#allocation7 + $0xb0] ss:$8 sps:$4 sm:$0xff]   ;;  %v720_v28 = vld [vmem:[#allocation7 + $0xc4] ss:$8 sps:$4 sm:$0xff]  }
  0x54   :  { %v722_v29 = vld [vmem:[#allocation7 + $0xc0] ss:$8 sps:$4 sm:$0xff]   ;;  %v723_v30 = vld [vmem:[#allocation7 + $0xd4] ss:$8 sps:$4 sm:$0xff]   ;;  %v725_v31 = vld [vmem:[#allocation7 + $0xd0] ss:$8 sps:$4 sm:$0xff]  }
  0x55   :  { %v726_v32 = vld [vmem:[#allocation7 + $0xe4] ss:$8 sps:$4 sm:$0xff]   ;;  %v728_v33 = vld [vmem:[#allocation7 + $0xe0] ss:$8 sps:$4 sm:$0xff]   ;;  %v729_v34 = vld [vmem:[#allocation7 + $0xf4] ss:$8 sps:$4 sm:$0xff]  }
  0x56   :  { %364 = vmatpush1.bf16.msra.mxu1 %v692_v9  ;;  %v731_v35 = vld [vmem:[#allocation7 + $0xf0] ss:$8 sps:$4 sm:$0xff]   ;;  %v732_v36 = vld [vmem:[#allocation8 + $0x40] sm:$0xff]   ;;  %v734_v38 = vld [vmem:[#allocation8 + $0x48] sm:$0xff]   ;;  %v87_v49 = vshrl.u32 %v86_v48, 7 }
  0x57   :  { %365 = vmatprep.subr.bf16.mxu1 %v693_v10  ;;  %v733_v37 = vld [vmem:[#allocation8] sm:$0xff]   ;;  %649 = vmatprep.subr.bf16.mxu0 %v732_v36  ;;  %v735_v39 = vld [vmem:[#allocation8 + $0x8] sm:$0xff]   ;;  %v736_v40 = vld [vmem:[#allocation8 + $0x50] sm:$0xff]  }
  0x58   :  { %650 = vmatpush3.bf16.msra.mxu0 %v733_v37  ;;  %v737_v41 = vld [vmem:[#allocation8 + $0x10] sm:$0xff]   ;;  %v738_v42 = vld [vmem:[#allocation8 + $0x58] sm:$0xff]   ;;  %v740_v44 = vld [vmem:[#allocation8 + $0x60] sm:$0xff]   ;;  %v88_v50 = vsub.s32 0, %v87_v49  ;;  %v92_v52 = vsub.s32 1, %v87_v49 }
  0x59   :  { %651 = vmatprep.subr.bf16.mxu0 %v734_v38  ;;  %v739_v43 = vld [vmem:[#allocation8 + $0x18] sm:$0xff]   ;;  %v741_v45 = vld [vmem:[#allocation8 + $0x20] sm:$0xff]   ;;  %v742_v46 = vld [vmem:[#allocation8 + $0x68] sm:$0xff]  }
  0x5a   :  { %366 = vmatpush1.bf16.msra.mxu1 %v695_v11  ;;  %v743_v47 = vld [vmem:[#allocation8 + $0x28] sm:$0xff]   ;;  %v744_v1 = vld [vmem:[#allocation8 + $0x70] sm:$0xff]   ;;  %v746_v3 = vld [vmem:[#allocation8 + $0x78] sm:$0xff]  }
  0x5b   :  { %367 = vmatprep.subr.bf16.mxu1 %v696_v12  ;;  %v84_v51 = vld [vmem:[%s993_s2] sm:$0x3]  ;;  %v745_v2 = vld [vmem:[#allocation8 + $0x30] sm:$0xff]   ;;  %v747_v4 = vld [vmem:[#allocation8 + $0x38] sm:$0xff]  }
  0x5c   :  { %652 = vmatpush3.bf16.msra.mxu0 %v735_v39  ;;  %v89_v53 = vrot.slane %v84_v51, %v88_v50  ;;  %v93_v54 = vrot.slane %v84_v51, %v92_v52  ;;  %v187_v5 = vld [vmem:[%s995_s4] sm:$0x3]  ;;  %s875_s4 = smov [#allocation10]  }
  0x5d   :  { %653 = vmatprep.subr.bf16.mxu0 %v736_v40  ;;  %v192_v6 = vrot.slane %v187_v5, %v88_v50  ;;  %v196_v7 = vrot.slane %v187_v5, %v92_v52  ;;  %s586_s30 = sshll.u32 %s875_s4, 4  ;;  %s587_s30 = int_to_ptr.vmem [resolvable:$true] %s586_s30 }
  0x5e   :  { %368 = vmatpush1.bf16.msra.mxu1 %v698_v13  ;;  %s836_s8 = scalar_lea.vmem %s587_s30, 128  ;;  %p841_p5 = scmp.lt.s32.totalorder %s587_s30, %s587_s30 }
  0x5f   :  { %369 = vmatprep.subr.bf16.mxu1 %v699_v14  ;;  %p837_p4 = scmp.ne.s32.totalorder %s587_s30, %s836_s8  ;;  %p842_p6 = scmp.lt.s32.totalorder %s836_s8, %s836_s8 }
  0x60   :  { %654 = vmatpush3.bf16.msra.mxu0 %v737_v41 }
  0x61   :  { %655 = vmatprep.subr.bf16.mxu0 %v738_v42  ;;  %p843_p7 = por %p842_p6, %p841_p5 }
  0x62   :  { %370 = vmatpush1.bf16.msra.mxu1 %v701_v15 }
  0x63   :  { %371 = vmatprep.subr.bf16.mxu1 %v702_v16  ;;  %p844_p8 = pnand %p843_p7, %p837_p4 }
  0x64   :  { %656 = vmatpush3.bf16.msra.mxu0 %v739_v43 }
  0x65   :  { %657 = vmatprep.subr.bf16.mxu0 %v740_v44 }
  0x66   :  { %372 = vmatpush1.bf16.msra.mxu1 %v704_v17 }
  0x67   :  { %373 = vmatprep.subr.bf16.mxu1 %v705_v18 }
  0x68   :  { %658 = vmatpush3.bf16.msra.mxu0 %v741_v45 }
  0x69   :  { %659 = vmatprep.subr.bf16.mxu0 %v742_v46 }
  0x6a   :  { %374 = vmatpush1.bf16.msra.mxu1 %v707_v19  ;;  %v632_v19 = vld [vmem:[%s997_s6] ss:$0 sm:$0xff] }
  0x6b   :  { %375 = vmatprep.subr.bf16.mxu1 %v708_v20 }
  0x6c   :  { %660 = vmatpush3.bf16.msra.mxu0 %v743_v47 }
  0x6d   :  { %661 = vmatprep.subr.bf16.mxu0 %v744_v1 }
  0x6e   :  { %376 = vmatpush1.bf16.msra.mxu1 %v710_v21 }
  0x6f   :  { %377 = vmatprep.subr.bf16.mxu1 %v711_v22 }
  0x70   :  { %662 = vmatpush3.bf16.msra.mxu0 %v745_v2 }
  0x71   :  { %663 = vmatprep.subr.bf16.mxu0 %v746_v3 }
  0x72   :  { %378 = vmatpush1.bf16.msra.mxu1 %v713_v23 }
  0x73   :  { %379 = vmatprep.subr.bf16.mxu1 %v714_v24 }
  0x74   :  { %664 = vmatpush3.bf16.msra.mxu0 %v747_v4 }
  0x76   :  { %380 = vmatpush1.bf16.msra.mxu1 %v716_v25 }
  0x77   :  { %381 = vmatprep.subr.bf16.mxu1 %v717_v26 }
  0x7a   :  { %382 = vmatpush1.bf16.msra.mxu1 %v719_v27 }
  0x7b   :  { %383 = vmatprep.subr.bf16.mxu1 %v720_v28 }
  0x7e   :  { %384 = vmatpush1.bf16.msra.mxu1 %v722_v29 }
  0x7f   :  { %385 = vmatprep.subr.bf16.mxu1 %v723_v30 }
  0x82   :  { %386 = vmatpush1.bf16.msra.mxu1 %v725_v31 }
  0x83   :  { %387 = vmatprep.subr.bf16.mxu1 %v726_v32 }
  0x86   :  { %388 = vmatpush1.bf16.msra.mxu1 %v728_v33 }
  0x87   :  { %389 = vmatprep.subr.bf16.mxu1 %v729_v34 }
  0x8a   :  { %390 = vmatpush1.bf16.msra.mxu1 %v731_v35 }
 0x122   :  { %v144_v55 = vpop.f32.mrb[0].mxu0 }
 0x123   :  { %v145_v56 = vadd.f32 %v144_v55, %v89_v53  ;;  %v146_v57 = vpop.f32.mrb[1].mxu0 }
 0x124   :  { %v147_v58 = vadd.f32 %v146_v57, %v93_v54  ;;  %v148_v59 = vpop.f32.mrb[2].mxu0 }
 0x125   :  { %v151_v60 = vmax.f32 %v145_v56, 0.0  ;;  %v149_v61 = vpop.f32.mrb[3].mxu0 }
 0x126   :  { %v152_v62 = vmax.f32 %v147_v58, 0.0 }
 0x127   :  { %v153_v0 = vpack.c.bf16 %v151_v60, %v151_v60 }
 0x128   :  { %v154_v63 = vpack.c.bf16 %v152_v62, %v152_v62 }
 0x12a   :  { %391 = vmatprep.mubr.bf16.mxu1 %v154_v63 }
 0x12b   :  { %392 = vmatmul.mubr.bf16.vlgmr.msra.gmra.mrb[0].mxu1 %v153_v0 }
 0x1fe   :  { %v393_v8 = vpop.f32.mrb[0].mxu1 }
 0x1ff   :  { %v394_v9 = vadd.f32 %v393_v8, %v192_v6  ;;  %v395_v10 = vpop.f32.mrb[1].mxu1 }
 0x200   :  { %v396_v11 = vadd.f32 %v395_v10, %v196_v7  ;;  %v397_v12 = vpop.f32.mrb[2].mxu1 }
 0x201   :  { %v400_v13 = vmax.f32 %v394_v9, 0.0  ;;  %v398_v14 = vpop.f32.mrb[3].mxu1 }
 0x202   :  { %v401_v15 = vmax.f32 %v396_v11, 0.0 }
 0x203   :  { %v402_v17 = vpack.c.bf16 %v400_v13, %v400_v13 }
 0x204   :  { %v403_v16 = vpack.c.bf16 %v401_v15, %v401_v15 }
 0x206   :  { %571 = vmatprep.mubr.bf16.mxu0 %v403_v16 }
 0x207   :  { %572 = vmatmul.mubr.bf16.vlgmr.msra.gmra.mrb[4].mxu0 %v402_v17 }
 0x2da   :  { %v665_v18 = vpop.f32.mrb[4].mxu0 }
 0x2db   :  { %v666_v20 = vpop.f32.mrb[5].mxu0 }
 0x2dc   :  { %v667_v21 = vadd.f32 %v666_v20, %v665_v18  ;;  %v668_v22 = vpop.f32.mrb[6].mxu0 }
 0x2dd   :  { %v669_v23 = vpop.f32.mrb[7].mxu0 }
 0x2de   :  { %v574_v24 = vadd.f32 %v667_v21, %v632_v19 }
 0x2e0   :  { %579 = vst [vmem:[#allocation10] sm:$0xff] %v574_v24 }
 0x2e1   :  { %847 = shalt.err (!%p844_p8)
}
 0x2e2   :  { %s848_s6 = scalar_lea.hbm %s998_s7, 128 }
 0x2e3   :  { %p849_p9 = scmp.ne.s32.totalorder %s998_s7, %s848_s6  ;;  %p852_p10 = scmp.lt.u32.totalorder %s848_s6, %s998_s7 }
 0x2e5   :  { %p854_p11 = pnand %p852_p10, %p849_p9 }
 0x2e7   :  { %857 = shalt.err (!%p854_p11)
}
 0x2e8   :  { %589 = dma.vmem_to_hbm [thread:$0]  %s587_s30, 128, %s998_s7, [#allocation4]  }
 0x2e9   :  { %864 = dma.done.wait [#allocation4], 128  }
 0x2ea   :  { %865 = vsyncadd [#allocation4], 4294967168 }
 0x2eb   :  { %593 = vsyncpa [#allocation3], 1 }
 0x2ec   :  { %594 = vsyncpa [#allocation6], 1 }
 0x2ed   :  { %595 = vsyncpa [#allocation9], 1 }
 0x2ee   :  { %596 = vsyncpa [#allocation4], 1 }

</bundles_post_ra>
